<compile_context>
chip_gen: v7x
topology: tpu7x:2x2x1
jax: 0.10.0
libtpu: 0.0.40
codegen_flags: <defaults>
</compile_context>

<pallas_src>
import functools

import jax
import jax.numpy as jnp
from jax import lax
from jax.experimental import pallas as pl
from jax.experimental.pallas import tpu as pltpu


def _cdiv(a, b):
    return -(-a // b)


def _round_up(a, m):
    return _cdiv(a, m) * m


def _num_tensorcores():
    """Best-effort TensorCore count per chip (v7x has 2; earlier gens 1)."""
    try:
        kind = jax.devices()[0].device_kind.lower()
        return 2 if ("v7" in kind or "7x" in kind) else 1
    except Exception:
        return 1


def _xi_kernel(w_ref, b_ref, x_ref, o_ref):
    # w: (out_feat, in_feat)  -- PyTorch nn.Linear layout, grid-invariant
    # b: (1, out_feat)        -- grid-invariant
    # x: (tile, in_feat)      -- one batch tile
    # o: (tile, out_feat)     -- written directly in the module's layout
    x = x_ref[...].astype(w_ref.dtype)            # no-op for f32; bf16 opt-in
    acc = lax.dot_general(
        x, w_ref[...],
        dimension_numbers=(((1,), (1,)), ((), ())),   # X @ W^T on the MXU
        preferred_element_type=jnp.float32,
    )
    acc = acc + b_ref[...]                        # (1, out_feat) row broadcast
    o_ref[...] = jnp.tanh(acc).astype(o_ref.dtype)


def xi_prepare_params(weight, bias, matmul_dtype=None):
    """One-time parameter prep (init-time, not on the per-call hot path).

    Weight stays in PyTorch (out_features, in_features) layout (the kernel
    contracts on dim 1 of both operands, so no transpose is ever needed).
    Bias becomes a (1, out_features) row so it broadcasts over batch rows.
    `matmul_dtype=jnp.bfloat16` opts in to bf16 MXU inputs (f32 accumulate).
    """
    if matmul_dtype is not None:
        weight = weight.astype(matmul_dtype)
    return weight, bias.reshape(1, -1)


def xi_forward(x, weight, bias_row, s, *, tile_b=1024, min_parallel_tiles=None):
    """x: (bs, 2*ln); weight: (s*s, 2*ln) (PyTorch layout); bias_row: (1, s*s)."""
    bs, in_feat = x.shape
    out_feat = s * s
    assert weight.shape == (out_feat, in_feat)
    assert bias_row.shape == (1, out_feat)

    if min_parallel_tiles is None:
        min_parallel_tiles = _num_tensorcores()

    # Batch sits on the sublane axis -> only needs to be a multiple of 8.
    bs8 = _round_up(max(bs, 1), 8)

    # Tile count: one big tile on single-TC chips (amortize per-step
    # overhead); at least `min_parallel_tiles` tiles (v7x: 2) when the batch
    # is large enough to be worth sharding across TensorCores.
    n_tiles = _cdiv(bs8, tile_b)
    if bs8 >= 256:
        n_tiles = max(n_tiles, min_parallel_tiles)
    tile = _round_up(_cdiv(bs8, n_tiles), 8)
    bs_p = n_tiles * tile

    xp = x if bs_p == bs else jnp.pad(x, ((0, bs_p - bs), (0, 0)))

    itemsize = jnp.dtype(x.dtype).itemsize
    cost = pl.CostEstimate(
        flops=2 * bs_p * in_feat * out_feat + 2 * bs_p * out_feat,
        transcendentals=bs_p * out_feat,
        bytes_accessed=(bs_p * in_feat + bs_p * out_feat) * itemsize
        + weight.size * jnp.dtype(weight.dtype).itemsize
        + bias_row.size * jnp.dtype(bias_row.dtype).itemsize,
    )

    out = pl.pallas_call(
        _xi_kernel,
        out_shape=jax.ShapeDtypeStruct((bs_p, out_feat), x.dtype),
        grid=(n_tiles,),
        in_specs=[
            pl.BlockSpec((out_feat, in_feat), lambda i: (0, 0)),  # weight (resident)
            pl.BlockSpec((1, out_feat), lambda i: (0, 0)),        # bias (resident)
            pl.BlockSpec((tile, in_feat), lambda i: (i, 0)),      # x batch tile
        ],
        out_specs=pl.BlockSpec((tile, out_feat), lambda i: (i, 0)),
        compiler_params=pltpu.CompilerParams(
            dimension_semantics=("parallel",),
        ),
        cost_estimate=cost,
    )(weight, bias_row, xp)

    if bs_p != bs:
        out = out[:bs]
    # Contiguous (bs, s*s) -> (bs, s, s): a free view-like reshape.
    return out.reshape(bs, s, s)


def _reference(x, weight, bias, s):
    bs = x.shape[0]
    return jnp.tanh(x @ weight.T + bias).reshape(bs, s, s)


if __name__ == "__main__":
    ln = 16     # in_features = 2 * ln = 32
    s = 4       # out_features = s * s = 16

    key = jax.random.PRNGKey(0)
    kw, kb, kx = jax.random.split(key, 3)

    bound = 1.0 / (2 * ln) ** 0.5
    weight = jax.random.uniform(kw, (s * s, 2 * ln), minval=-bound,
                                maxval=bound, dtype=jnp.float32)
    bias = jax.random.uniform(kb, (s * s,), minval=-bound, maxval=bound,
                              dtype=jnp.float32)

    # One-time (init-time) parameter prep -- not on the per-call hot path.
    w_prep, b_prep = xi_prepare_params(weight, bias)

    fwd = jax.jit(functools.partial(xi_forward, weight=w_prep,
                                    bias_row=b_prep, s=s))

    ok = True
    # Exercise: large even batch (multi-tile on v7x), 8-aligned ragged batch
    # (no pad / no slice), non-multiple-of-8 batch (pad-to-8 path), tiny batch.
    for bs in (1024, 600, 7, 8):
        x = jax.random.normal(jax.random.fold_in(kx, bs), (bs, 2 * ln),
                              dtype=jnp.float32)
        out = jax.block_until_ready(fwd(x))
        ref = _reference(x, weight, bias, s)
        ok &= out.shape == (bs, s, s)
        ok &= bool(jnp.allclose(out, ref, atol=2e-5, rtol=2e-5))

    if ok:
        print("KERNEL_OK")
    else:
        print("KERNEL_MISMATCH")
</pallas_src>

<mosaic_0001>
module attributes {stable_mosaic.version = 11 : i64} {
  func.func @_xi_kernel(%arg0: i32, %arg1: memref<16x32xf32, #tpu.memory_space<vmem>>, %arg2: memref<1x16xf32, #tpu.memory_space<vmem>>, %arg3: memref<1024x32xf32, #tpu.memory_space<vmem>>, %arg4: memref<1024x16xf32, #tpu.memory_space<vmem>>) attributes {dimension_semantics = [#tpu.dimension_semantics<parallel>], iteration_bounds = array<i64: 1>, scalar_prefetch = 0 : i64, scratch_operands = 0 : i64, tpu.core_type = #tpu.core_type<tc>, window_params = [{pipeline_mode = #tpu.pipeline_mode<synchronous>, transform_indices = @transform_0, window_bounds = array<i64: 16, 32>}, {pipeline_mode = #tpu.pipeline_mode<synchronous>, transform_indices = @transform_1, window_bounds = array<i64: 1, 16>}, {transform_indices = @transform_2, window_bounds = array<i64: 1024, 32>}, {transform_indices = @transform_3, window_bounds = array<i64: 1024, 16>}]} {
    %c0 = arith.constant 0 : index
    %c0_0 = arith.constant 0 : index
    %0 = vector.load %arg3[%c0, %c0_0] : memref<1024x32xf32, #tpu.memory_space<vmem>>, vector<1024x32xf32>
    %c0_1 = arith.constant 0 : index
    %c0_2 = arith.constant 0 : index
    %1 = vector.load %arg1[%c0_1, %c0_2] : memref<16x32xf32, #tpu.memory_space<vmem>>, vector<16x32xf32>
    %cst = arith.constant dense<0.000000e+00> : vector<1024x16xf32>
    %2 = tpu.matmul %0, %1, %cst {dimension_numbers = #tpu.dot_dimension_numbers<[1], [1], [0], [0], [0, 0, 1, 0], [], []>} : vector<1024x32xf32>, vector<16x32xf32>, vector<1024x16xf32> -> vector<1024x16xf32>
    %c0_3 = arith.constant 0 : index
    %c0_4 = arith.constant 0 : index
    %3 = vector.load %arg2[%c0_3, %c0_4] : memref<1x16xf32, #tpu.memory_space<vmem>>, vector<1x16xf32>
    %4 = vector.broadcast %3 : vector<1x16xf32> to vector<1024x16xf32>
    %5 = arith.addf %2, %4 : vector<1024x16xf32>
    %6 = math.tanh %5 : vector<1024x16xf32>
    %c0_5 = arith.constant 0 : index
    %c0_6 = arith.constant 0 : index
    %7 = vector.load %arg4[%c0_5, %c0_6] : memref<1024x16xf32, #tpu.memory_space<vmem>>, vector<1024x16xf32>
    tpu.vector_store %arg4[%c0_5, %c0_6], %6 {strides = array<i32>} : memref<1024x16xf32, #tpu.memory_space<vmem>>, vector<1024x16xf32>,
    return
  }
  func.func @transform_0(%arg0: i32) -> (i32, i32) {
    %c0_i32 = arith.constant 0 : i32
    %c0_i32_0 = arith.constant 0 : i32
    %c0_i32_1 = arith.constant 0 : i32
    return %c0_i32, %c0_i32_0 : i32, i32
  }
  func.func @transform_1(%arg0: i32) -> (i32, i32) {
    %c0_i32 = arith.constant 0 : i32
    %c0_i32_0 = arith.constant 0 : i32
    %c0_i32_1 = arith.constant 0 : i32
    return %c0_i32, %c0_i32_0 : i32, i32
  }
  func.func @transform_2(%arg0: i32) -> (i32, i32) {
    %c0_i32 = arith.constant 0 : i32
    %c0_i32_0 = arith.constant 0 : i32
    return %arg0, %c0_i32 : i32, i32
  }
  func.func @transform_3(%arg0: i32) -> (i32, i32) {
    %c0_i32 = arith.constant 0 : i32
    %c0_i32_0 = arith.constant 0 : i32
    return %arg0, %c0_i32 : i32, i32
  }
}

</mosaic_0001>

<bundles_post_ra>
// kernel: xi_forward.1
= control target key start
LH: loop header
LB: loop body
LE: loop exit
PB: predicated region body
PF: predicated region fallthrough
CT: control target
= control target key end

     0   :  { %vm151_vm0 = vcmask 261120   ;;  %vm1375_vm2 = vcmask 130048   ;;  %s3420_s0 = inlined_call_operand.vmem [shape: f32[16,32], index: 0, kind: input, shape index: {}]   ;;  %s3421_s2 = inlined_call_operand.vmem [shape: f32[1024,32], index: 2, kind: input, shape index: {}]   ;;  %s3422_s1 = inlined_call_operand.vmem [shape: f32[1,16], index: 1, kind: input, shape index: {}]   ;;  %s3423_s3 = inlined_call_operand.vmem [shape: f32[1024,16], index: 3, kind: output, shape index: {}]  }
   0x1   :  { %v142_v0 = vld [vmem:[%s3420_s0] sm:$0xff]  ;;  %v143_v1 = vld [vmem:[%s3420_s0 + $0x8] sm:$0xff]  ;;  %vm1966_vm1 = vmpackc.low %vm151_vm0, %vm151_vm0 }
   0x2   :  { %v1965_v2 = vpack.c.bf16 %v143_v1, %v142_v0  ;;  %v14_v3 = vld [vmem:[%s3421_s2] sm:$0xff]  ;;  %v15_v5 = vld [vmem:[%s3421_s2 + $0x8] sm:$0xff]  ;;  %v16_v7 = vld [vmem:[%s3421_s2 + $0x10] sm:$0xff] }
   0x3   :  { %v78_v4 = vld [vmem:[%s3421_s2 + $0x200] sm:$0xff]  ;;  %1773 = vmatprep.mubr.msk.f32.mxu0 %vm151_vm0, %v14_v3  ;;  %v79_v6 = vld [vmem:[%s3421_s2 + $0x208] sm:$0xff]  ;;  %v80_v8 = vld [vmem:[%s3421_s2 + $0x210] sm:$0xff] }
   0x4   :  { %1869 = vmatprep.mubr.msk.f32.mxu1 %vm151_vm0, %v78_v4  ;;  %1967 = vmatprep.subr.msk.bf16.mxu0 %vm1966_vm1, %v1965_v2  ;;  %v17_v9 = vld [vmem:[%s3421_s2 + $0x18] sm:$0xff]  ;;  %v18_v11 = vld [vmem:[%s3421_s2 + $0x20] sm:$0xff]  ;;  %v19_v13 = vld [vmem:[%s3421_s2 + $0x28] sm:$0xff] }
   0x5   :  { %1971 = vmatprep.subr.msk.bf16.mxu1 %vm1966_vm1, %v1965_v2  ;;  %1970 = vmatpush3.bf16.xpose.msk.msra.mxu0 %vm1966_vm1, %v1965_v2  ;;  %v81_v10 = vld [vmem:[%s3421_s2 + $0x218] sm:$0xff]  ;;  %v82_v12 = vld [vmem:[%s3421_s2 + $0x220] sm:$0xff]  ;;  %v83_v14 = vld [vmem:[%s3421_s2 + $0x228] sm:$0xff] }
   0x6   :  { %1972 = vmatpush3.bf16.xpose.msk.msra.mxu1 %vm1966_vm1, %v1965_v2  ;;  %v20_v15 = vld [vmem:[%s3421_s2 + $0x30] sm:$0xff]  ;;  %v21_v17 = vld [vmem:[%s3421_s2 + $0x38] sm:$0xff]  ;;  %v22_v19 = vld [vmem:[%s3421_s2 + $0x40] sm:$0xff] }
   0x7   :  { %v84_v16 = vld [vmem:[%s3421_s2 + $0x230] sm:$0xff]  ;;  %v85_v18 = vld [vmem:[%s3421_s2 + $0x238] sm:$0xff]  ;;  %v86_v20 = vld [vmem:[%s3421_s2 + $0x240] sm:$0xff] }
   0x8   :  { %v23_v21 = vld [vmem:[%s3421_s2 + $0x48] sm:$0xff]  ;;  %v24_v23 = vld [vmem:[%s3421_s2 + $0x50] sm:$0xff]  ;;  %v25_v25 = vld [vmem:[%s3421_s2 + $0x58] sm:$0xff] }
   0x9   :  { %v87_v22 = vld [vmem:[%s3421_s2 + $0x248] sm:$0xff]  ;;  %v88_v24 = vld [vmem:[%s3421_s2 + $0x250] sm:$0xff]  ;;  %v89_v26 = vld [vmem:[%s3421_s2 + $0x258] sm:$0xff] }
   0xa   :  { %v26_v27 = vld [vmem:[%s3421_s2 + $0x60] sm:$0xff]  ;;  %v27_v29 = vld [vmem:[%s3421_s2 + $0x68] sm:$0xff]  ;;  %v28_v31 = vld [vmem:[%s3421_s2 + $0x70] sm:$0xff] }
   0xb   :  { %v90_v28 = vld [vmem:[%s3421_s2 + $0x260] sm:$0xff]  ;;  %v91_v30 = vld [vmem:[%s3421_s2 + $0x268] sm:$0xff]  ;;  %v92_v32 = vld [vmem:[%s3421_s2 + $0x270] sm:$0xff] }
   0xc   :  { %1774 = vmatmul.mubr.msk.f32.vlgmr.msra.gmra.mrb[0].mxu0 %vm151_vm0, %v15_v5  ;;  %v29_v33 = vld [vmem:[%s3421_s2 + $0x78] sm:$0xff]  ;;  %v30_v35 = vld [vmem:[%s3421_s2 + $0x80] sm:$0xff]  ;;  %v31_v37 = vld [vmem:[%s3421_s2 + $0x88] sm:$0xff] }
   0xd   :  { %1870 = vmatmul.mubr.msk.f32.vlgmr.msra.gmra.mrb[0].mxu1 %vm151_vm0, %v79_v6  ;;  %1776 = vmatprep.mubr.msk.f32.mxu0 %vm151_vm0, %v16_v7  ;;  %v93_v34 = vld [vmem:[%s3421_s2 + $0x278] sm:$0xff]  ;;  %v94_v36 = vld [vmem:[%s3421_s2 + $0x280] sm:$0xff]  ;;  %v95_v38 = vld [vmem:[%s3421_s2 + $0x288] sm:$0xff] }
   0xe   :  { %1872 = vmatprep.mubr.msk.f32.mxu1 %vm151_vm0, %v80_v8  ;;  %v32_v39 = vld [vmem:[%s3421_s2 + $0x90] sm:$0xff]  ;;  %v33_v41 = vld [vmem:[%s3421_s2 + $0x98] sm:$0xff]  ;;  %v34_v43 = vld [vmem:[%s3421_s2 + $0xa0] sm:$0xff] }
   0xf   :  { %v96_v40 = vld [vmem:[%s3421_s2 + $0x290] sm:$0xff]  ;;  %v97_v42 = vld [vmem:[%s3421_s2 + $0x298] sm:$0xff]  ;;  %v98_v44 = vld [vmem:[%s3421_s2 + $0x2a0] sm:$0xff] }
  0x10   :  { %1777 = vmatmul.mubr.msk.f32.gmra.mrb[2].mxu0 %vm151_vm0, %v17_v9  ;;  %v35_v45 = vld [vmem:[%s3421_s2 + $0xa8] sm:$0xff]  ;;  %v36_v47 = vld [vmem:[%s3421_s2 + $0xb0] sm:$0xff]  ;;  %v37_v49 = vld [vmem:[%s3421_s2 + $0xb8] sm:$0xff] }
  0x11   :  { %1873 = vmatmul.mubr.msk.f32.gmra.mrb[2].mxu1 %vm151_vm0, %v81_v10  ;;  %1779 = vmatprep.mubr.msk.f32.mxu0 %vm151_vm0, %v18_v11  ;;  %v99_v46 = vld [vmem:[%s3421_s2 + $0x2a8] sm:$0xff]  ;;  %v100_v48 = vld [vmem:[%s3421_s2 + $0x2b0] sm:$0xff]  ;;  %v101_v50 = vld [vmem:[%s3421_s2 + $0x2b8] sm:$0xff] }
  0x12   :  { %1875 = vmatprep.mubr.msk.f32.mxu1 %vm151_vm0, %v82_v12  ;;  %v38_v51 = vld [vmem:[%s3421_s2 + $0xc0] sm:$0xff]  ;;  %v39_v53 = vld [vmem:[%s3421_s2 + $0xc8] sm:$0xff]  ;;  %v40_v55 = vld [vmem:[%s3421_s2 + $0xd0] sm:$0xff] }
  0x13   :  { %v102_v52 = vld [vmem:[%s3421_s2 + $0x2c0] sm:$0xff]  ;;  %v103_v54 = vld [vmem:[%s3421_s2 + $0x2c8] sm:$0xff]  ;;  %v104_v56 = vld [vmem:[%s3421_s2 + $0x2d0] sm:$0xff] }
  0x14   :  { %1780 = vmatmul.mubr.msk.f32.gmra.mrb[4].mxu0 %vm151_vm0, %v19_v13  ;;  %v41_v57 = vld [vmem:[%s3421_s2 + $0xd8] sm:$0xff]  ;;  %v42_v59 = vld [vmem:[%s3421_s2 + $0xe0] sm:$0xff]  ;;  %v43_v61 = vld [vmem:[%s3421_s2 + $0xe8] sm:$0xff] }
  0x15   :  { %1876 = vmatmul.mubr.msk.f32.gmra.mrb[4].mxu1 %vm151_vm0, %v83_v14  ;;  %1782 = vmatprep.mubr.msk.f32.mxu0 %vm151_vm0, %v20_v15  ;;  %v105_v58 = vld [vmem:[%s3421_s2 + $0x2d8] sm:$0xff]  ;;  %v106_v60 = vld [vmem:[%s3421_s2 + $0x2e0] sm:$0xff]  ;;  %v107_v62 = vld [vmem:[%s3421_s2 + $0x2e8] sm:$0xff] }
  0x16   :  { %1878 = vmatprep.mubr.msk.f32.mxu1 %vm151_vm0, %v84_v16  ;;  %v44_v63 = vld [vmem:[%s3421_s2 + $0xf0] sm:$0xff]  ;;  %v45_v1 = vld [vmem:[%s3421_s2 + $0xf8] sm:$0xff]  ;;  %v46_v3 = vld [vmem:[%s3421_s2 + $0x100] sm:$0xff] }
  0x17   :  { %v108_v0 = vld [vmem:[%s3421_s2 + $0x2f0] sm:$0xff]  ;;  %v109_v2 = vld [vmem:[%s3421_s2 + $0x2f8] sm:$0xff]  ;;  %v110_v4 = vld [vmem:[%s3421_s2 + $0x300] sm:$0xff] }
  0x18   :  { %1783 = vmatmul.mubr.msk.f32.gmra.mrb[6].mxu0 %vm151_vm0, %v21_v17  ;;  %v47_v5 = vld [vmem:[%s3421_s2 + $0x108] sm:$0xff]  ;;  %v48_v7 = vld [vmem:[%s3421_s2 + $0x110] sm:$0xff]  ;;  %v49_v9 = vld [vmem:[%s3421_s2 + $0x118] sm:$0xff] }
  0x19   :  { %1879 = vmatmul.mubr.msk.f32.gmra.mrb[6].mxu1 %vm151_vm0, %v85_v18  ;;  %1785 = vmatprep.mubr.msk.f32.mxu0 %vm151_vm0, %v22_v19  ;;  %v111_v6 = vld [vmem:[%s3421_s2 + $0x308] sm:$0xff]  ;;  %v112_v8 = vld [vmem:[%s3421_s2 + $0x310] sm:$0xff]  ;;  %v113_v10 = vld [vmem:[%s3421_s2 + $0x318] sm:$0xff] }
  0x1a   :  { %1881 = vmatprep.mubr.msk.f32.mxu1 %vm151_vm0, %v86_v20  ;;  %v50_v11 = vld [vmem:[%s3421_s2 + $0x120] sm:$0xff]  ;;  %v51_v13 = vld [vmem:[%s3421_s2 + $0x128] sm:$0xff]  ;;  %v52_v15 = vld [vmem:[%s3421_s2 + $0x130] sm:$0xff] }
  0x1b   :  { %v114_v12 = vld [vmem:[%s3421_s2 + $0x320] sm:$0xff]  ;;  %v115_v14 = vld [vmem:[%s3421_s2 + $0x328] sm:$0xff]  ;;  %v116_v16 = vld [vmem:[%s3421_s2 + $0x330] sm:$0xff] }
  0x1c   :  { %1786 = vmatmul.mubr.msk.f32.gmra.mrb[8].mxu0 %vm151_vm0, %v23_v21  ;;  %v53_v17 = vld [vmem:[%s3421_s2 + $0x138] sm:$0xff]  ;;  %v54_v19 = vld [vmem:[%s3421_s2 + $0x140] sm:$0xff]  ;;  %v55_v21 = vld [vmem:[%s3421_s2 + $0x148] sm:$0xff] }
  0x1d   :  { %1882 = vmatmul.mubr.msk.f32.gmra.mrb[8].mxu1 %vm151_vm0, %v87_v22  ;;  %1788 = vmatprep.mubr.msk.f32.mxu0 %vm151_vm0, %v24_v23  ;;  %v117_v18 = vld [vmem:[%s3421_s2 + $0x338] sm:$0xff]  ;;  %v118_v20 = vld [vmem:[%s3421_s2 + $0x340] sm:$0xff]  ;;  %v119_v22 = vld [vmem:[%s3421_s2 + $0x348] sm:$0xff] }
  0x1e   :  { %1884 = vmatprep.mubr.msk.f32.mxu1 %vm151_vm0, %v88_v24  ;;  %v56_v23 = vld [vmem:[%s3421_s2 + $0x150] sm:$0xff] }
  0x1f   :  { %v120_v24 = vld [vmem:[%s3421_s2 + $0x350] sm:$0xff] }
  0x20   :  { %1789 = vmatmul.mubr.msk.f32.gmra.mrb[10].mxu0 %vm151_vm0, %v25_v25  ;;  %v57_v25 = vld [vmem:[%s3421_s2 + $0x158] sm:$0xff] }
  0x21   :  { %1885 = vmatmul.mubr.msk.f32.gmra.mrb[10].mxu1 %vm151_vm0, %v89_v26  ;;  %1791 = vmatprep.mubr.msk.f32.mxu0 %vm151_vm0, %v26_v27  ;;  %v121_v26 = vld [vmem:[%s3421_s2 + $0x358] sm:$0xff]  ;;  %v58_v27 = vld [vmem:[%s3421_s2 + $0x160] sm:$0xff] }
  0x22   :  { %1887 = vmatprep.mubr.msk.f32.mxu1 %vm151_vm0, %v90_v28  ;;  %v122_v28 = vld [vmem:[%s3421_s2 + $0x360] sm:$0xff] }
  0x24   :  { %1792 = vmatmul.mubr.msk.f32.gmra.mrb[12].mxu0 %vm151_vm0, %v27_v29  ;;  %v59_v29 = vld [vmem:[%s3421_s2 + $0x168] sm:$0xff] }
  0x25   :  { %1888 = vmatmul.mubr.msk.f32.gmra.mrb[12].mxu1 %vm151_vm0, %v91_v30  ;;  %1794 = vmatprep.mubr.msk.f32.mxu0 %vm151_vm0, %v28_v31  ;;  %v123_v30 = vld [vmem:[%s3421_s2 + $0x368] sm:$0xff]  ;;  %v60_v31 = vld [vmem:[%s3421_s2 + $0x170] sm:$0xff] }
  0x26   :  { %1890 = vmatprep.mubr.msk.f32.mxu1 %vm151_vm0, %v92_v32  ;;  %v124_v32 = vld [vmem:[%s3421_s2 + $0x370] sm:$0xff] }
  0x28   :  { %1795 = vmatmul.mubr.msk.f32.gmra.mrb[14].mxu0 %vm151_vm0, %v29_v33  ;;  %v61_v33 = vld [vmem:[%s3421_s2 + $0x178] sm:$0xff] }
  0x29   :  { %1891 = vmatmul.mubr.msk.f32.gmra.mrb[14].mxu1 %vm151_vm0, %v93_v34  ;;  %1797 = vmatprep.mubr.msk.f32.mxu0 %vm151_vm0, %v30_v35  ;;  %v125_v34 = vld [vmem:[%s3421_s2 + $0x378] sm:$0xff]  ;;  %v62_v35 = vld [vmem:[%s3421_s2 + $0x180] sm:$0xff] }
  0x2a   :  { %1893 = vmatprep.mubr.msk.f32.mxu1 %vm151_vm0, %v94_v36  ;;  %v126_v36 = vld [vmem:[%s3421_s2 + $0x380] sm:$0xff] }
  0x2c   :  { %1798 = vmatmul.mubr.msk.f32.gmra.mrb[16].mxu0 %vm151_vm0, %v31_v37  ;;  %v63_v37 = vld [vmem:[%s3421_s2 + $0x188] sm:$0xff] }
  0x2d   :  { %1894 = vmatmul.mubr.msk.f32.gmra.mrb[16].mxu1 %vm151_vm0, %v95_v38  ;;  %1800 = vmatprep.mubr.msk.f32.mxu0 %vm151_vm0, %v32_v39  ;;  %v127_v38 = vld [vmem:[%s3421_s2 + $0x388] sm:$0xff]  ;;  %v64_v39 = vld [vmem:[%s3421_s2 + $0x190] sm:$0xff] }
  0x2e   :  { %1896 = vmatprep.mubr.msk.f32.mxu1 %vm151_vm0, %v96_v40  ;;  %v128_v40 = vld [vmem:[%s3421_s2 + $0x390] sm:$0xff] }
  0x30   :  { %1801 = vmatmul.mubr.msk.f32.gmra.mrb[18].mxu0 %vm151_vm0, %v33_v41  ;;  %v65_v41 = vld [vmem:[%s3421_s2 + $0x198] sm:$0xff] }
  0x31   :  { %1897 = vmatmul.mubr.msk.f32.gmra.mrb[18].mxu1 %vm151_vm0, %v97_v42  ;;  %1803 = vmatprep.mubr.msk.f32.mxu0 %vm151_vm0, %v34_v43  ;;  %v129_v42 = vld [vmem:[%s3421_s2 + $0x398] sm:$0xff]  ;;  %v66_v43 = vld [vmem:[%s3421_s2 + $0x1a0] sm:$0xff] }
  0x32   :  { %1899 = vmatprep.mubr.msk.f32.mxu1 %vm151_vm0, %v98_v44  ;;  %v130_v44 = vld [vmem:[%s3421_s2 + $0x3a0] sm:$0xff] }
  0x34   :  { %1804 = vmatmul.mubr.msk.f32.gmra.mrb[20].mxu0 %vm151_vm0, %v35_v45  ;;  %v67_v45 = vld [vmem:[%s3421_s2 + $0x1a8] sm:$0xff] }
  0x35   :  { %1900 = vmatmul.mubr.msk.f32.gmra.mrb[20].mxu1 %vm151_vm0, %v99_v46  ;;  %1806 = vmatprep.mubr.msk.f32.mxu0 %vm151_vm0, %v36_v47  ;;  %v131_v46 = vld [vmem:[%s3421_s2 + $0x3a8] sm:$0xff]  ;;  %v68_v47 = vld [vmem:[%s3421_s2 + $0x1b0] sm:$0xff] }
  0x36   :  { %1902 = vmatprep.mubr.msk.f32.mxu1 %vm151_vm0, %v100_v48  ;;  %v132_v48 = vld [vmem:[%s3421_s2 + $0x3b0] sm:$0xff] }
  0x38   :  { %1807 = vmatmul.mubr.msk.f32.gmra.mrb[22].mxu0 %vm151_vm0, %v37_v49  ;;  %v69_v49 = vld [vmem:[%s3421_s2 + $0x1b8] sm:$0xff] }
  0x39   :  { %1903 = vmatmul.mubr.msk.f32.gmra.mrb[22].mxu1 %vm151_vm0, %v101_v50  ;;  %1809 = vmatprep.mubr.msk.f32.mxu0 %vm151_vm0, %v38_v51  ;;  %v133_v50 = vld [vmem:[%s3421_s2 + $0x3b8] sm:$0xff]  ;;  %v70_v51 = vld [vmem:[%s3421_s2 + $0x1c0] sm:$0xff] }
  0x3a   :  { %1905 = vmatprep.mubr.msk.f32.mxu1 %vm151_vm0, %v102_v52  ;;  %v134_v52 = vld [vmem:[%s3421_s2 + $0x3c0] sm:$0xff] }
  0x3c   :  { %1810 = vmatmul.mubr.msk.f32.gmra.mrb[24].mxu0 %vm151_vm0, %v39_v53  ;;  %v71_v53 = vld [vmem:[%s3421_s2 + $0x1c8] sm:$0xff] }
  0x3d   :  { %1906 = vmatmul.mubr.msk.f32.gmra.mrb[24].mxu1 %vm151_vm0, %v103_v54  ;;  %1812 = vmatprep.mubr.msk.f32.mxu0 %vm151_vm0, %v40_v55  ;;  %v135_v54 = vld [vmem:[%s3421_s2 + $0x3c8] sm:$0xff]  ;;  %v72_v55 = vld [vmem:[%s3421_s2 + $0x1d0] sm:$0xff] }
  0x3e   :  { %1908 = vmatprep.mubr.msk.f32.mxu1 %vm151_vm0, %v104_v56  ;;  %v136_v56 = vld [vmem:[%s3421_s2 + $0x3d0] sm:$0xff] }
  0x40   :  { %1813 = vmatmul.mubr.msk.f32.gmra.mrb[26].mxu0 %vm151_vm0, %v41_v57  ;;  %v73_v57 = vld [vmem:[%s3421_s2 + $0x1d8] sm:$0xff] }
  0x41   :  { %1909 = vmatmul.mubr.msk.f32.gmra.mrb[26].mxu1 %vm151_vm0, %v105_v58  ;;  %1815 = vmatprep.mubr.msk.f32.mxu0 %vm151_vm0, %v42_v59  ;;  %v137_v58 = vld [vmem:[%s3421_s2 + $0x3d8] sm:$0xff]  ;;  %v74_v59 = vld [vmem:[%s3421_s2 + $0x1e0] sm:$0xff] }
  0x42   :  { %1911 = vmatprep.mubr.msk.f32.mxu1 %vm151_vm0, %v106_v60  ;;  %v138_v60 = vld [vmem:[%s3421_s2 + $0x3e0] sm:$0xff] }
  0x44   :  { %1816 = vmatmul.mubr.msk.f32.gmra.mrb[28].mxu0 %vm151_vm0, %v43_v61  ;;  %v75_v61 = vld [vmem:[%s3421_s2 + $0x1e8] sm:$0xff] }
  0x45   :  { %1912 = vmatmul.mubr.msk.f32.gmra.mrb[28].mxu1 %vm151_vm0, %v107_v62  ;;  %1818 = vmatprep.mubr.msk.f32.mxu0 %vm151_vm0, %v44_v63  ;;  %v139_v62 = vld [vmem:[%s3421_s2 + $0x3e8] sm:$0xff]  ;;  %v76_v63 = vld [vmem:[%s3421_s2 + $0x1f0] sm:$0xff] }
  0x46   :  { %1914 = vmatprep.mubr.msk.f32.mxu1 %vm151_vm0, %v108_v0  ;;  %v140_v0 = vld [vmem:[%s3421_s2 + $0x3f0] sm:$0xff] }
  0x48   :  { %1819 = vmatmul.mubr.msk.f32.gmra.mrb[30].mxu0 %vm151_vm0, %v45_v1  ;;  %v77_v1 = vld [vmem:[%s3421_s2 + $0x1f8] sm:$0xff] }
  0x49   :  { %1915 = vmatmul.mubr.msk.f32.gmra.mrb[30].mxu1 %vm151_vm0, %v109_v2  ;;  %1821 = vmatprep.mubr.msk.f32.mxu0 %vm151_vm0, %v46_v3  ;;  %v141_v2 = vld [vmem:[%s3421_s2 + $0x3f8] sm:$0xff]  ;;  %v2773_v3 = vld [vmem:[%s3422_s1] ss:$0 sm:$0xff] }
  0x4a   :  { %1917 = vmatprep.mubr.msk.f32.mxu1 %vm151_vm0, %v110_v4 }
  0x4c   :  { %1822 = vmatmul.mubr.msk.f32.gmra.mrb[32].mxu0 %vm151_vm0, %v47_v5 }
  0x4d   :  { %1918 = vmatmul.mubr.msk.f32.gmra.mrb[32].mxu1 %vm151_vm0, %v111_v6  ;;  %1824 = vmatprep.mubr.msk.f32.mxu0 %vm151_vm0, %v48_v7 }
  0x4e   :  { %1920 = vmatprep.mubr.msk.f32.mxu1 %vm151_vm0, %v112_v8 }
  0x50   :  { %1825 = vmatmul.mubr.msk.f32.gmra.mrb[34].mxu0 %vm151_vm0, %v49_v9 }
  0x51   :  { %1921 = vmatmul.mubr.msk.f32.gmra.mrb[34].mxu1 %vm151_vm0, %v113_v10  ;;  %1827 = vmatprep.mubr.msk.f32.mxu0 %vm151_vm0, %v50_v11 }
  0x52   :  { %1923 = vmatprep.mubr.msk.f32.mxu1 %vm151_vm0, %v114_v12 }
  0x54   :  { %1828 = vmatmul.mubr.msk.f32.gmra.mrb[36].mxu0 %vm151_vm0, %v51_v13 }
  0x55   :  { %1924 = vmatmul.mubr.msk.f32.gmra.mrb[36].mxu1 %vm151_vm0, %v115_v14  ;;  %1830 = vmatprep.mubr.msk.f32.mxu0 %vm151_vm0, %v52_v15 }
  0x56   :  { %1926 = vmatprep.mubr.msk.f32.mxu1 %vm151_vm0, %v116_v16 }
  0x58   :  { %1831 = vmatmul.mubr.msk.f32.gmra.mrb[38].mxu0 %vm151_vm0, %v53_v17 }
  0x59   :  { %1927 = vmatmul.mubr.msk.f32.gmra.mrb[38].mxu1 %vm151_vm0, %v117_v18  ;;  %1833 = vmatprep.mubr.msk.f32.mxu0 %vm151_vm0, %v54_v19 }
  0x5a   :  { %1929 = vmatprep.mubr.msk.f32.mxu1 %vm151_vm0, %v118_v20 }
  0x5c   :  { %1834 = vmatmul.mubr.msk.f32.gmra.mrb[40].mxu0 %vm151_vm0, %v55_v21 }
  0x5d   :  { %1930 = vmatmul.mubr.msk.f32.gmra.mrb[40].mxu1 %vm151_vm0, %v119_v22  ;;  %1836 = vmatprep.mubr.msk.f32.mxu0 %vm151_vm0, %v56_v23 }
  0x5e   :  { %1932 = vmatprep.mubr.msk.f32.mxu1 %vm151_vm0, %v120_v24 }
  0x60   :  { %1837 = vmatmul.mubr.msk.f32.gmra.mrb[42].mxu0 %vm151_vm0, %v57_v25 }
  0x61   :  { %1933 = vmatmul.mubr.msk.f32.gmra.mrb[42].mxu1 %vm151_vm0, %v121_v26  ;;  %1839 = vmatprep.mubr.msk.f32.mxu0 %vm151_vm0, %v58_v27 }
  0x62   :  { %1935 = vmatprep.mubr.msk.f32.mxu1 %vm151_vm0, %v122_v28 }
  0x64   :  { %1840 = vmatmul.mubr.msk.f32.gmra.mrb[44].mxu0 %vm151_vm0, %v59_v29 }
  0x65   :  { %1936 = vmatmul.mubr.msk.f32.gmra.mrb[44].mxu1 %vm151_vm0, %v123_v30  ;;  %1842 = vmatprep.mubr.msk.f32.mxu0 %vm151_vm0, %v60_v31 }
  0x66   :  { %1938 = vmatprep.mubr.msk.f32.mxu1 %vm151_vm0, %v124_v32 }
  0x68   :  { %1843 = vmatmul.mubr.msk.f32.gmra.mrb[46].mxu0 %vm151_vm0, %v61_v33 }
  0x69   :  { %1939 = vmatmul.mubr.msk.f32.gmra.mrb[46].mxu1 %vm151_vm0, %v125_v34  ;;  %1845 = vmatprep.mubr.msk.f32.mxu0 %vm151_vm0, %v62_v35 }
  0x6a   :  { %1941 = vmatprep.mubr.msk.f32.mxu1 %vm151_vm0, %v126_v36 }
  0x6c   :  { %1846 = vmatmul.mubr.msk.f32.gmra.mrb[48].mxu0 %vm151_vm0, %v63_v37 }
  0x6d   :  { %1942 = vmatmul.mubr.msk.f32.gmra.mrb[48].mxu1 %vm151_vm0, %v127_v38  ;;  %1848 = vmatprep.mubr.msk.f32.mxu0 %vm151_vm0, %v64_v39 }
  0x6e   :  { %1944 = vmatprep.mubr.msk.f32.mxu1 %vm151_vm0, %v128_v40 }
  0x70   :  { %1849 = vmatmul.mubr.msk.f32.gmra.mrb[50].mxu0 %vm151_vm0, %v65_v41 }
  0x71   :  { %1945 = vmatmul.mubr.msk.f32.gmra.mrb[50].mxu1 %vm151_vm0, %v129_v42  ;;  %1851 = vmatprep.mubr.msk.f32.mxu0 %vm151_vm0, %v66_v43 }
  0x72   :  { %1947 = vmatprep.mubr.msk.f32.mxu1 %vm151_vm0, %v130_v44 }
  0x74   :  { %1852 = vmatmul.mubr.msk.f32.gmra.mrb[52].mxu0 %vm151_vm0, %v67_v45 }
  0x75   :  { %1948 = vmatmul.mubr.msk.f32.gmra.mrb[52].mxu1 %vm151_vm0, %v131_v46  ;;  %1854 = vmatprep.mubr.msk.f32.mxu0 %vm151_vm0, %v68_v47 }
  0x76   :  { %1950 = vmatprep.mubr.msk.f32.mxu1 %vm151_vm0, %v132_v48 }
  0x78   :  { %1855 = vmatmul.mubr.msk.f32.gmra.mrb[54].mxu0 %vm151_vm0, %v69_v49 }
  0x79   :  { %1951 = vmatmul.mubr.msk.f32.gmra.mrb[54].mxu1 %vm151_vm0, %v133_v50  ;;  %1857 = vmatprep.mubr.msk.f32.mxu0 %vm151_vm0, %v70_v51 }
  0x7a   :  { %1953 = vmatprep.mubr.msk.f32.mxu1 %vm151_vm0, %v134_v52 }
  0x7c   :  { %1858 = vmatmul.mubr.msk.f32.gmra.mrb[56].mxu0 %vm151_vm0, %v71_v53 }
  0x7d   :  { %1954 = vmatmul.mubr.msk.f32.gmra.mrb[56].mxu1 %vm151_vm0, %v135_v54  ;;  %1860 = vmatprep.mubr.msk.f32.mxu0 %vm151_vm0, %v72_v55 }
  0x7e   :  { %1956 = vmatprep.mubr.msk.f32.mxu1 %vm151_vm0, %v136_v56 }
  0x80   :  { %1861 = vmatmul.mubr.msk.f32.gmra.mrb[58].mxu0 %vm151_vm0, %v73_v57 }
  0x81   :  { %1957 = vmatmul.mubr.msk.f32.gmra.mrb[58].mxu1 %vm151_vm0, %v137_v58  ;;  %1863 = vmatprep.mubr.msk.f32.mxu0 %vm151_vm0, %v74_v59 }
  0x82   :  { %1959 = vmatprep.mubr.msk.f32.mxu1 %vm151_vm0, %v138_v60 }
  0x84   :  { %1864 = vmatmul.mubr.msk.f32.gmra.mrb[60].mxu0 %vm151_vm0, %v75_v61 }
  0x85   :  { %1960 = vmatmul.mubr.msk.f32.gmra.mrb[60].mxu1 %vm151_vm0, %v139_v62  ;;  %1866 = vmatprep.mubr.msk.f32.mxu0 %vm151_vm0, %v76_v63 }
  0x86   :  { %1962 = vmatprep.mubr.msk.f32.mxu1 %vm151_vm0, %v140_v0 }
  0x88   :  { %1867 = vmatmul.mubr.msk.f32.gmra.mrb[62].mxu0 %vm151_vm0, %v77_v1 }
  0x89   :  { %1963 = vmatmul.mubr.msk.f32.gmra.mrb[62].mxu1 %vm151_vm0, %v141_v2 }
  0xdf   :  { %v1775_v4 = vpop.f32.mrb[0].mxu0 }
  0xe0   :  { %v1871_v5 = vpop.f32.mrb[0].mxu1  ;;  %v614_v6 = vadd.f32 %v1775_v4, %v2773_v3  ;;  %v608_v8 = vpop.f32.mrb[1].mxu0 }
  0xe1   :  { %v934_v7 = vadd.f32 %v1871_v5, %v2773_v3  ;;  %v928_v9 = vpop.f32.mrb[1].mxu1  ;;  %v609_v10 = vadd.f32 %v2773_v3, %v608_v8 }
  0xe2   :  { %v929_v11 = vadd.f32 %v2773_v3, %v928_v9  ;;  %1973 = vtanh.f32 %v614_v6 }
  0xe3   :  { %1975 = vtanh.f32 %v934_v7  ;;  %v1778_v12 = vpop.f32.mrb[2].mxu0 }
  0xe4   :  { %v1874_v13 = vpop.f32.mrb[2].mxu1  ;;  %1977 = vtanh.f32 %v609_v10  ;;  %v624_v14 = vadd.f32 %v1778_v12, %v2773_v3  ;;  %v618_v16 = vpop.f32.mrb[3].mxu0 }
  0xe5   :  { %v944_v15 = vadd.f32 %v1874_v13, %v2773_v3  ;;  %v938_v17 = vpop.f32.mrb[3].mxu1  ;;  %1979 = vtanh.f32 %v929_v11  ;;  %v619_v18 = vadd.f32 %v2773_v3, %v618_v16 }
  0xe6   :  { %v939_v19 = vadd.f32 %v2773_v3, %v938_v17  ;;  %1981 = vtanh.f32 %v624_v14 }
  0xe7   :  { %1983 = vtanh.f32 %v944_v15  ;;  %v1781_v20 = vpop.f32.mrb[4].mxu0 }
  0xe8   :  { %v1877_v21 = vpop.f32.mrb[4].mxu1  ;;  %1985 = vtanh.f32 %v619_v18  ;;  %v634_v22 = vadd.f32 %v1781_v20, %v2773_v3  ;;  %v628_v24 = vpop.f32.mrb[5].mxu0 }
  0xe9   :  { %v954_v23 = vadd.f32 %v1877_v21, %v2773_v3  ;;  %v948_v25 = vpop.f32.mrb[5].mxu1  ;;  %1987 = vtanh.f32 %v939_v19  ;;  %v629_v26 = vadd.f32 %v2773_v3, %v628_v24 }
  0xea   :  { %v949_v27 = vadd.f32 %v2773_v3, %v948_v25  ;;  %1989 = vtanh.f32 %v634_v22 }
  0xeb   :  { %1991 = vtanh.f32 %v954_v23  ;;  %v1784_v28 = vpop.f32.mrb[6].mxu0 }
  0xec   :  { %v1880_v29 = vpop.f32.mrb[6].mxu1  ;;  %v1974_v30 = vpop.eup %1973  ;;  %1993 = vtanh.f32 %v629_v26  ;;  %v644_v31 = vadd.f32 %v1784_v28, %v2773_v3 }
  0xed   :  { %v964_v32 = vadd.f32 %v1880_v29, %v2773_v3  ;;  %v638_v33 = vpop.f32.mrb[7].mxu0  ;;  %v958_v34 = vpop.f32.mrb[7].mxu1  ;;  %1377 = vst.msk [vmem:[%s3423_s3 + $0x8] sm:$0xff] %vm1375_vm2, %v1974_v30  ;;  %1995 = vtanh.f32 %v949_v27 }
  0xee   :  { %v1976_v35 = vpop.eup %1975  ;;  %v639_v36 = vadd.f32 %v2773_v3, %v638_v33  ;;  %v959_v37 = vadd.f32 %v2773_v3, %v958_v34  ;;  %1997 = vtanh.f32 %v644_v31 }
  0xef   :  { %v1978_v38 = vpop.eup %1977  ;;  %1441 = vst.msk [vmem:[%s3423_s3 + $0x208] sm:$0xff] %vm1375_vm2, %v1976_v35  ;;  %1999 = vtanh.f32 %v964_v32  ;;  %v1787_v40 = vpop.f32.mrb[8].mxu0 }
  0xf0   :  { %v1980_v39 = vpop.eup %1979  ;;  %1376 = vst.msk [vmem:[%s3423_s3] sm:$0xff] %vm1375_vm2, %v1978_v38  ;;  %v1883_v41 = vpop.f32.mrb[8].mxu1  ;;  %2001 = vtanh.f32 %v639_v36  ;;  %v654_v43 = vadd.f32 %v1787_v40, %v2773_v3 }
  0xf1   :  { %v1982_v42 = vpop.eup %1981  ;;  %1440 = vst.msk [vmem:[%s3423_s3 + $0x200] sm:$0xff] %vm1375_vm2, %v1980_v39  ;;  %v974_v44 = vadd.f32 %v1883_v41, %v2773_v3  ;;  %v648_v45 = vpop.f32.mrb[9].mxu0  ;;  %2003 = vtanh.f32 %v959_v37 }
  0xf2   :  { %v968_v46 = vpop.f32.mrb[9].mxu1  ;;  %v1984_v47 = vpop.eup %1983  ;;  %1379 = vst.msk [vmem:[%s3423_s3 + $0x18] sm:$0xff] %vm1375_vm2, %v1982_v42  ;;  %v649_v48 = vadd.f32 %v2773_v3, %v648_v45  ;;  %2005 = vtanh.f32 %v654_v43 }
  0xf3   :  { %v969_v49 = vadd.f32 %v2773_v3, %v968_v46  ;;  %v1986_v50 = vpop.eup %1985  ;;  %1443 = vst.msk [vmem:[%s3423_s3 + $0x218] sm:$0xff] %vm1375_vm2, %v1984_v47  ;;  %2007 = vtanh.f32 %v974_v44  ;;  %v1790_v52 = vpop.f32.mrb[10].mxu0 }
  0xf4   :  { %v1988_v51 = vpop.eup %1987  ;;  %1378 = vst.msk [vmem:[%s3423_s3 + $0x10] sm:$0xff] %vm1375_vm2, %v1986_v50  ;;  %v1886_v53 = vpop.f32.mrb[10].mxu1  ;;  %2009 = vtanh.f32 %v649_v48  ;;  %v664_v55 = vadd.f32 %v1790_v52, %v2773_v3 }
  0xf5   :  { %v1990_v54 = vpop.eup %1989  ;;  %1442 = vst.msk [vmem:[%s3423_s3 + $0x210] sm:$0xff] %vm1375_vm2, %v1988_v51  ;;  %v984_v56 = vadd.f32 %v1886_v53, %v2773_v3  ;;  %v658_v57 = vpop.f32.mrb[11].mxu0  ;;  %2011 = vtanh.f32 %v969_v49 }
  0xf6   :  { %v978_v58 = vpop.f32.mrb[11].mxu1  ;;  %v1992_v59 = vpop.eup %1991  ;;  %1381 = vst.msk [vmem:[%s3423_s3 + $0x28] sm:$0xff] %vm1375_vm2, %v1990_v54  ;;  %v659_v60 = vadd.f32 %v2773_v3, %v658_v57  ;;  %2013 = vtanh.f32 %v664_v55 }
  0xf7   :  { %v979_v61 = vadd.f32 %v2773_v3, %v978_v58  ;;  %v1994_v62 = vpop.eup %1993  ;;  %1445 = vst.msk [vmem:[%s3423_s3 + $0x228] sm:$0xff] %vm1375_vm2, %v1992_v59  ;;  %2015 = vtanh.f32 %v984_v56  ;;  %v1793_v0 = vpop.f32.mrb[12].mxu0 }
  0xf8   :  { %v1996_v63 = vpop.eup %1995  ;;  %1380 = vst.msk [vmem:[%s3423_s3 + $0x20] sm:$0xff] %vm1375_vm2, %v1994_v62  ;;  %v1889_v1 = vpop.f32.mrb[12].mxu1  ;;  %2017 = vtanh.f32 %v659_v60  ;;  %v674_v4 = vadd.f32 %v1793_v0, %v2773_v3 }
  0xf9   :  { %v1998_v2 = vpop.eup %1997  ;;  %1444 = vst.msk [vmem:[%s3423_s3 + $0x220] sm:$0xff] %vm1375_vm2, %v1996_v63  ;;  %v994_v5 = vadd.f32 %v1889_v1, %v2773_v3  ;;  %v668_v6 = vpop.f32.mrb[13].mxu0  ;;  %2019 = vtanh.f32 %v979_v61 }
  0xfa   :  { %v988_v7 = vpop.f32.mrb[13].mxu1  ;;  %v2000_v8 = vpop.eup %1999  ;;  %1383 = vst.msk [vmem:[%s3423_s3 + $0x38] sm:$0xff] %vm1375_vm2, %v1998_v2  ;;  %v669_v9 = vadd.f32 %v2773_v3, %v668_v6  ;;  %2021 = vtanh.f32 %v674_v4 }
  0xfb   :  { %v989_v10 = vadd.f32 %v2773_v3, %v988_v7  ;;  %v2002_v11 = vpop.eup %2001  ;;  %1447 = vst.msk [vmem:[%s3423_s3 + $0x238] sm:$0xff] %vm1375_vm2, %v2000_v8  ;;  %2023 = vtanh.f32 %v994_v5  ;;  %v1796_v13 = vpop.f32.mrb[14].mxu0 }
  0xfc   :  { %v2004_v12 = vpop.eup %2003  ;;  %1382 = vst.msk [vmem:[%s3423_s3 + $0x30] sm:$0xff] %vm1375_vm2, %v2002_v11  ;;  %v1892_v14 = vpop.f32.mrb[14].mxu1  ;;  %2025 = vtanh.f32 %v669_v9  ;;  %v684_v16 = vadd.f32 %v1796_v13, %v2773_v3 }
  0xfd   :  { %v2006_v15 = vpop.eup %2005  ;;  %1446 = vst.msk [vmem:[%s3423_s3 + $0x230] sm:$0xff] %vm1375_vm2, %v2004_v12  ;;  %v1004_v17 = vadd.f32 %v1892_v14, %v2773_v3  ;;  %v678_v18 = vpop.f32.mrb[15].mxu0  ;;  %2027 = vtanh.f32 %v989_v10 }
  0xfe   :  { %v998_v19 = vpop.f32.mrb[15].mxu1  ;;  %v2008_v20 = vpop.eup %2007  ;;  %1385 = vst.msk [vmem:[%s3423_s3 + $0x48] sm:$0xff] %vm1375_vm2, %v2006_v15  ;;  %v679_v21 = vadd.f32 %v2773_v3, %v678_v18  ;;  %2029 = vtanh.f32 %v684_v16 }
  0xff   :  { %v999_v22 = vadd.f32 %v2773_v3, %v998_v19  ;;  %v2010_v23 = vpop.eup %2009  ;;  %1449 = vst.msk [vmem:[%s3423_s3 + $0x248] sm:$0xff] %vm1375_vm2, %v2008_v20  ;;  %2031 = vtanh.f32 %v1004_v17  ;;  %v1799_v25 = vpop.f32.mrb[16].mxu0 }
 0x100   :  { %v2012_v24 = vpop.eup %2011  ;;  %1384 = vst.msk [vmem:[%s3423_s3 + $0x40] sm:$0xff] %vm1375_vm2, %v2010_v23  ;;  %v1895_v26 = vpop.f32.mrb[16].mxu1  ;;  %2033 = vtanh.f32 %v679_v21  ;;  %v694_v28 = vadd.f32 %v1799_v25, %v2773_v3 }
 0x101   :  { %v2014_v27 = vpop.eup %2013  ;;  %1448 = vst.msk [vmem:[%s3423_s3 + $0x240] sm:$0xff] %vm1375_vm2, %v2012_v24  ;;  %v1014_v29 = vadd.f32 %v1895_v26, %v2773_v3  ;;  %v688_v30 = vpop.f32.mrb[17].mxu0  ;;  %2035 = vtanh.f32 %v999_v22 }
 0x102   :  { %v1008_v31 = vpop.f32.mrb[17].mxu1  ;;  %v2016_v32 = vpop.eup %2015  ;;  %1387 = vst.msk [vmem:[%s3423_s3 + $0x58] sm:$0xff] %vm1375_vm2, %v2014_v27  ;;  %v689_v33 = vadd.f32 %v2773_v3, %v688_v30  ;;  %2037 = vtanh.f32 %v694_v28 }
 0x103   :  { %v1009_v34 = vadd.f32 %v2773_v3, %v1008_v31  ;;  %v2018_v35 = vpop.eup %2017  ;;  %1451 = vst.msk [vmem:[%s3423_s3 + $0x258] sm:$0xff] %vm1375_vm2, %v2016_v32  ;;  %2039 = vtanh.f32 %v1014_v29  ;;  %v1802_v37 = vpop.f32.mrb[18].mxu0 }
 0x104   :  { %v2020_v36 = vpop.eup %2019  ;;  %1386 = vst.msk [vmem:[%s3423_s3 + $0x50] sm:$0xff] %vm1375_vm2, %v2018_v35  ;;  %v1898_v38 = vpop.f32.mrb[18].mxu1  ;;  %2041 = vtanh.f32 %v689_v33  ;;  %v704_v40 = vadd.f32 %v1802_v37, %v2773_v3 }
 0x105   :  { %v2022_v39 = vpop.eup %2021  ;;  %1450 = vst.msk [vmem:[%s3423_s3 + $0x250] sm:$0xff] %vm1375_vm2, %v2020_v36  ;;  %v1024_v41 = vadd.f32 %v1898_v38, %v2773_v3  ;;  %v698_v42 = vpop.f32.mrb[19].mxu0  ;;  %2043 = vtanh.f32 %v1009_v34 }
 0x106   :  { %v1018_v43 = vpop.f32.mrb[19].mxu1  ;;  %v2024_v44 = vpop.eup %2023  ;;  %1389 = vst.msk [vmem:[%s3423_s3 + $0x68] sm:$0xff] %vm1375_vm2, %v2022_v39  ;;  %v699_v45 = vadd.f32 %v2773_v3, %v698_v42  ;;  %2045 = vtanh.f32 %v704_v40 }
 0x107   :  { %v1019_v46 = vadd.f32 %v2773_v3, %v1018_v43  ;;  %v2026_v47 = vpop.eup %2025  ;;  %1453 = vst.msk [vmem:[%s3423_s3 + $0x268] sm:$0xff] %vm1375_vm2, %v2024_v44  ;;  %2047 = vtanh.f32 %v1024_v41  ;;  %v1805_v49 = vpop.f32.mrb[20].mxu0 }
 0x108   :  { %v2028_v48 = vpop.eup %2027  ;;  %1388 = vst.msk [vmem:[%s3423_s3 + $0x60] sm:$0xff] %vm1375_vm2, %v2026_v47  ;;  %v1901_v50 = vpop.f32.mrb[20].mxu1  ;;  %2049 = vtanh.f32 %v699_v45  ;;  %v714_v52 = vadd.f32 %v1805_v49, %v2773_v3 }
 0x109   :  { %v2030_v51 = vpop.eup %2029  ;;  %1452 = vst.msk [vmem:[%s3423_s3 + $0x260] sm:$0xff] %vm1375_vm2, %v2028_v48  ;;  %v1034_v53 = vadd.f32 %v1901_v50, %v2773_v3  ;;  %v708_v54 = vpop.f32.mrb[21].mxu0  ;;  %2051 = vtanh.f32 %v1019_v46 }
 0x10a   :  { %v1028_v55 = vpop.f32.mrb[21].mxu1  ;;  %v2032_v56 = vpop.eup %2031  ;;  %1391 = vst.msk [vmem:[%s3423_s3 + $0x78] sm:$0xff] %vm1375_vm2, %v2030_v51  ;;  %v709_v57 = vadd.f32 %v2773_v3, %v708_v54  ;;  %2053 = vtanh.f32 %v714_v52 }
 0x10b   :  { %v1029_v58 = vadd.f32 %v2773_v3, %v1028_v55  ;;  %v2034_v59 = vpop.eup %2033  ;;  %1455 = vst.msk [vmem:[%s3423_s3 + $0x278] sm:$0xff] %vm1375_vm2, %v2032_v56  ;;  %2055 = vtanh.f32 %v1034_v53  ;;  %v1808_v61 = vpop.f32.mrb[22].mxu0 }
 0x10c   :  { %v2036_v60 = vpop.eup %2035  ;;  %1390 = vst.msk [vmem:[%s3423_s3 + $0x70] sm:$0xff] %vm1375_vm2, %v2034_v59  ;;  %v1904_v62 = vpop.f32.mrb[22].mxu1  ;;  %2057 = vtanh.f32 %v709_v57  ;;  %v724_v0 = vadd.f32 %v1808_v61, %v2773_v3 }
 0x10d   :  { %v2038_v63 = vpop.eup %2037  ;;  %1454 = vst.msk [vmem:[%s3423_s3 + $0x270] sm:$0xff] %vm1375_vm2, %v2036_v60  ;;  %v1044_v1 = vadd.f32 %v1904_v62, %v2773_v3  ;;  %v718_v2 = vpop.f32.mrb[23].mxu0  ;;  %2059 = vtanh.f32 %v1029_v58 }
 0x10e   :  { %v1038_v4 = vpop.f32.mrb[23].mxu1  ;;  %v2040_v5 = vpop.eup %2039  ;;  %1393 = vst.msk [vmem:[%s3423_s3 + $0x88] sm:$0xff] %vm1375_vm2, %v2038_v63  ;;  %v719_v6 = vadd.f32 %v2773_v3, %v718_v2  ;;  %2061 = vtanh.f32 %v724_v0 }
 0x10f   :  { %v1039_v7 = vadd.f32 %v2773_v3, %v1038_v4  ;;  %v2042_v8 = vpop.eup %2041  ;;  %1457 = vst.msk [vmem:[%s3423_s3 + $0x288] sm:$0xff] %vm1375_vm2, %v2040_v5  ;;  %2063 = vtanh.f32 %v1044_v1  ;;  %v1811_v10 = vpop.f32.mrb[24].mxu0 }
 0x110   :  { %v2044_v9 = vpop.eup %2043  ;;  %1392 = vst.msk [vmem:[%s3423_s3 + $0x80] sm:$0xff] %vm1375_vm2, %v2042_v8  ;;  %v1907_v11 = vpop.f32.mrb[24].mxu1  ;;  %2065 = vtanh.f32 %v719_v6  ;;  %v734_v13 = vadd.f32 %v1811_v10, %v2773_v3 }
 0x111   :  { %v2046_v12 = vpop.eup %2045  ;;  %1456 = vst.msk [vmem:[%s3423_s3 + $0x280] sm:$0xff] %vm1375_vm2, %v2044_v9  ;;  %v1054_v14 = vadd.f32 %v1907_v11, %v2773_v3  ;;  %v728_v15 = vpop.f32.mrb[25].mxu0  ;;  %2067 = vtanh.f32 %v1039_v7 }
 0x112   :  { %v1048_v16 = vpop.f32.mrb[25].mxu1  ;;  %v2048_v17 = vpop.eup %2047  ;;  %1395 = vst.msk [vmem:[%s3423_s3 + $0x98] sm:$0xff] %vm1375_vm2, %v2046_v12  ;;  %v729_v18 = vadd.f32 %v2773_v3, %v728_v15  ;;  %2069 = vtanh.f32 %v734_v13 }
 0x113   :  { %v1049_v19 = vadd.f32 %v2773_v3, %v1048_v16  ;;  %v2050_v20 = vpop.eup %2049  ;;  %1459 = vst.msk [vmem:[%s3423_s3 + $0x298] sm:$0xff] %vm1375_vm2, %v2048_v17  ;;  %2071 = vtanh.f32 %v1054_v14  ;;  %v1814_v22 = vpop.f32.mrb[26].mxu0 }
 0x114   :  { %v2052_v21 = vpop.eup %2051  ;;  %1394 = vst.msk [vmem:[%s3423_s3 + $0x90] sm:$0xff] %vm1375_vm2, %v2050_v20  ;;  %v1910_v23 = vpop.f32.mrb[26].mxu1  ;;  %2073 = vtanh.f32 %v729_v18  ;;  %v744_v25 = vadd.f32 %v1814_v22, %v2773_v3 }
 0x115   :  { %v2054_v24 = vpop.eup %2053  ;;  %1458 = vst.msk [vmem:[%s3423_s3 + $0x290] sm:$0xff] %vm1375_vm2, %v2052_v21  ;;  %v1064_v26 = vadd.f32 %v1910_v23, %v2773_v3  ;;  %v738_v27 = vpop.f32.mrb[27].mxu0  ;;  %2075 = vtanh.f32 %v1049_v19 }
 0x116   :  { %v1058_v28 = vpop.f32.mrb[27].mxu1  ;;  %v2056_v29 = vpop.eup %2055  ;;  %1397 = vst.msk [vmem:[%s3423_s3 + $0xa8] sm:$0xff] %vm1375_vm2, %v2054_v24  ;;  %v739_v30 = vadd.f32 %v2773_v3, %v738_v27  ;;  %2077 = vtanh.f32 %v744_v25 }
 0x117   :  { %v1059_v31 = vadd.f32 %v2773_v3, %v1058_v28  ;;  %v2058_v32 = vpop.eup %2057  ;;  %1461 = vst.msk [vmem:[%s3423_s3 + $0x2a8] sm:$0xff] %vm1375_vm2, %v2056_v29  ;;  %2079 = vtanh.f32 %v1064_v26  ;;  %v1817_v34 = vpop.f32.mrb[28].mxu0 }
 0x118   :  { %v2060_v33 = vpop.eup %2059  ;;  %1396 = vst.msk [vmem:[%s3423_s3 + $0xa0] sm:$0xff] %vm1375_vm2, %v2058_v32  ;;  %v1913_v35 = vpop.f32.mrb[28].mxu1  ;;  %2081 = vtanh.f32 %v739_v30  ;;  %v754_v37 = vadd.f32 %v1817_v34, %v2773_v3 }
 0x119   :  { %v2062_v36 = vpop.eup %2061  ;;  %1460 = vst.msk [vmem:[%s3423_s3 + $0x2a0] sm:$0xff] %vm1375_vm2, %v2060_v33  ;;  %v1074_v38 = vadd.f32 %v1913_v35, %v2773_v3  ;;  %v748_v39 = vpop.f32.mrb[29].mxu0  ;;  %2083 = vtanh.f32 %v1059_v31 }
 0x11a   :  { %v1068_v40 = vpop.f32.mrb[29].mxu1  ;;  %v2064_v41 = vpop.eup %2063  ;;  %1399 = vst.msk [vmem:[%s3423_s3 + $0xb8] sm:$0xff] %vm1375_vm2, %v2062_v36  ;;  %v749_v42 = vadd.f32 %v2773_v3, %v748_v39  ;;  %2085 = vtanh.f32 %v754_v37 }
 0x11b   :  { %v1069_v43 = vadd.f32 %v2773_v3, %v1068_v40  ;;  %v2066_v44 = vpop.eup %2065  ;;  %1463 = vst.msk [vmem:[%s3423_s3 + $0x2b8] sm:$0xff] %vm1375_vm2, %v2064_v41  ;;  %2087 = vtanh.f32 %v1074_v38  ;;  %v1820_v46 = vpop.f32.mrb[30].mxu0 }
 0x11c   :  { %v2068_v45 = vpop.eup %2067  ;;  %1398 = vst.msk [vmem:[%s3423_s3 + $0xb0] sm:$0xff] %vm1375_vm2, %v2066_v44  ;;  %v1916_v47 = vpop.f32.mrb[30].mxu1  ;;  %2089 = vtanh.f32 %v749_v42  ;;  %v764_v49 = vadd.f32 %v1820_v46, %v2773_v3 }
 0x11d   :  { %v2070_v48 = vpop.eup %2069  ;;  %1462 = vst.msk [vmem:[%s3423_s3 + $0x2b0] sm:$0xff] %vm1375_vm2, %v2068_v45  ;;  %v1084_v50 = vadd.f32 %v1916_v47, %v2773_v3  ;;  %v758_v51 = vpop.f32.mrb[31].mxu0  ;;  %2091 = vtanh.f32 %v1069_v43 }
 0x11e   :  { %v1078_v52 = vpop.f32.mrb[31].mxu1  ;;  %v2072_v53 = vpop.eup %2071  ;;  %1401 = vst.msk [vmem:[%s3423_s3 + $0xc8] sm:$0xff] %vm1375_vm2, %v2070_v48  ;;  %v759_v54 = vadd.f32 %v2773_v3, %v758_v51  ;;  %2093 = vtanh.f32 %v764_v49 }
 0x11f   :  { %v1079_v55 = vadd.f32 %v2773_v3, %v1078_v52  ;;  %v2074_v56 = vpop.eup %2073  ;;  %1465 = vst.msk [vmem:[%s3423_s3 + $0x2c8] sm:$0xff] %vm1375_vm2, %v2072_v53  ;;  %2095 = vtanh.f32 %v1084_v50  ;;  %v1823_v58 = vpop.f32.mrb[32].mxu0 }
 0x120   :  { %v2076_v57 = vpop.eup %2075  ;;  %1400 = vst.msk [vmem:[%s3423_s3 + $0xc0] sm:$0xff] %vm1375_vm2, %v2074_v56  ;;  %v1919_v59 = vpop.f32.mrb[32].mxu1  ;;  %2097 = vtanh.f32 %v759_v54  ;;  %v774_v61 = vadd.f32 %v1823_v58, %v2773_v3 }
 0x121   :  { %v2078_v60 = vpop.eup %2077  ;;  %1464 = vst.msk [vmem:[%s3423_s3 + $0x2c0] sm:$0xff] %vm1375_vm2, %v2076_v57  ;;  %v1094_v62 = vadd.f32 %v1919_v59, %v2773_v3  ;;  %v768_v63 = vpop.f32.mrb[33].mxu0  ;;  %2099 = vtanh.f32 %v1079_v55 }
 0x122   :  { %v1088_v0 = vpop.f32.mrb[33].mxu1  ;;  %v2080_v1 = vpop.eup %2079  ;;  %1403 = vst.msk [vmem:[%s3423_s3 + $0xd8] sm:$0xff] %vm1375_vm2, %v2078_v60  ;;  %v769_v2 = vadd.f32 %v2773_v3, %v768_v63  ;;  %2101 = vtanh.f32 %v774_v61 }
 0x123   :  { %v1089_v4 = vadd.f32 %v2773_v3, %v1088_v0  ;;  %v2082_v5 = vpop.eup %2081  ;;  %1467 = vst.msk [vmem:[%s3423_s3 + $0x2d8] sm:$0xff] %vm1375_vm2, %v2080_v1  ;;  %2103 = vtanh.f32 %v1094_v62  ;;  %v1826_v7 = vpop.f32.mrb[34].mxu0 }
 0x124   :  { %v2084_v6 = vpop.eup %2083  ;;  %1402 = vst.msk [vmem:[%s3423_s3 + $0xd0] sm:$0xff] %vm1375_vm2, %v2082_v5  ;;  %v1922_v8 = vpop.f32.mrb[34].mxu1  ;;  %2105 = vtanh.f32 %v769_v2  ;;  %v784_v10 = vadd.f32 %v1826_v7, %v2773_v3 }
 0x125   :  { %v2086_v9 = vpop.eup %2085  ;;  %1466 = vst.msk [vmem:[%s3423_s3 + $0x2d0] sm:$0xff] %vm1375_vm2, %v2084_v6  ;;  %v1104_v11 = vadd.f32 %v1922_v8, %v2773_v3  ;;  %v778_v12 = vpop.f32.mrb[35].mxu0  ;;  %2107 = vtanh.f32 %v1089_v4 }
 0x126   :  { %v1098_v13 = vpop.f32.mrb[35].mxu1  ;;  %v2088_v14 = vpop.eup %2087  ;;  %1405 = vst.msk [vmem:[%s3423_s3 + $0xe8] sm:$0xff] %vm1375_vm2, %v2086_v9  ;;  %v779_v15 = vadd.f32 %v2773_v3, %v778_v12  ;;  %2109 = vtanh.f32 %v784_v10 }
 0x127   :  { %v1099_v16 = vadd.f32 %v2773_v3, %v1098_v13  ;;  %v2090_v17 = vpop.eup %2089  ;;  %1469 = vst.msk [vmem:[%s3423_s3 + $0x2e8] sm:$0xff] %vm1375_vm2, %v2088_v14  ;;  %2111 = vtanh.f32 %v1104_v11  ;;  %v1829_v19 = vpop.f32.mrb[36].mxu0 }
 0x128   :  { %v2092_v18 = vpop.eup %2091  ;;  %1404 = vst.msk [vmem:[%s3423_s3 + $0xe0] sm:$0xff] %vm1375_vm2, %v2090_v17  ;;  %v1925_v20 = vpop.f32.mrb[36].mxu1  ;;  %2113 = vtanh.f32 %v779_v15  ;;  %v794_v22 = vadd.f32 %v1829_v19, %v2773_v3 }
 0x129   :  { %v2094_v21 = vpop.eup %2093  ;;  %1468 = vst.msk [vmem:[%s3423_s3 + $0x2e0] sm:$0xff] %vm1375_vm2, %v2092_v18  ;;  %v1114_v23 = vadd.f32 %v1925_v20, %v2773_v3  ;;  %v788_v24 = vpop.f32.mrb[37].mxu0  ;;  %2115 = vtanh.f32 %v1099_v16 }
 0x12a   :  { %v1108_v25 = vpop.f32.mrb[37].mxu1  ;;  %v2096_v26 = vpop.eup %2095  ;;  %1407 = vst.msk [vmem:[%s3423_s3 + $0xf8] sm:$0xff] %vm1375_vm2, %v2094_v21  ;;  %v789_v27 = vadd.f32 %v2773_v3, %v788_v24  ;;  %2117 = vtanh.f32 %v794_v22 }
 0x12b   :  { %v1109_v28 = vadd.f32 %v2773_v3, %v1108_v25  ;;  %v2098_v29 = vpop.eup %2097  ;;  %1471 = vst.msk [vmem:[%s3423_s3 + $0x2f8] sm:$0xff] %vm1375_vm2, %v2096_v26  ;;  %2119 = vtanh.f32 %v1114_v23  ;;  %v1832_v31 = vpop.f32.mrb[38].mxu0 }
 0x12c   :  { %v2100_v30 = vpop.eup %2099  ;;  %1406 = vst.msk [vmem:[%s3423_s3 + $0xf0] sm:$0xff] %vm1375_vm2, %v2098_v29  ;;  %v1928_v32 = vpop.f32.mrb[38].mxu1  ;;  %2121 = vtanh.f32 %v789_v27  ;;  %v804_v34 = vadd.f32 %v1832_v31, %v2773_v3 }
 0x12d   :  { %v2102_v33 = vpop.eup %2101  ;;  %1470 = vst.msk [vmem:[%s3423_s3 + $0x2f0] sm:$0xff] %vm1375_vm2, %v2100_v30  ;;  %v1124_v35 = vadd.f32 %v1928_v32, %v2773_v3  ;;  %v798_v36 = vpop.f32.mrb[39].mxu0  ;;  %2123 = vtanh.f32 %v1109_v28 }
 0x12e   :  { %v1118_v37 = vpop.f32.mrb[39].mxu1  ;;  %v2104_v38 = vpop.eup %2103  ;;  %1409 = vst.msk [vmem:[%s3423_s3 + $0x108] sm:$0xff] %vm1375_vm2, %v2102_v33  ;;  %v799_v39 = vadd.f32 %v2773_v3, %v798_v36  ;;  %2125 = vtanh.f32 %v804_v34 }
 0x12f   :  { %v1119_v40 = vadd.f32 %v2773_v3, %v1118_v37  ;;  %v2106_v41 = vpop.eup %2105  ;;  %1473 = vst.msk [vmem:[%s3423_s3 + $0x308] sm:$0xff] %vm1375_vm2, %v2104_v38  ;;  %2127 = vtanh.f32 %v1124_v35  ;;  %v1835_v43 = vpop.f32.mrb[40].mxu0 }
 0x130   :  { %v2108_v42 = vpop.eup %2107  ;;  %1408 = vst.msk [vmem:[%s3423_s3 + $0x100] sm:$0xff] %vm1375_vm2, %v2106_v41  ;;  %v1931_v44 = vpop.f32.mrb[40].mxu1  ;;  %2129 = vtanh.f32 %v799_v39  ;;  %v814_v46 = vadd.f32 %v1835_v43, %v2773_v3 }
 0x131   :  { %v2110_v45 = vpop.eup %2109  ;;  %1472 = vst.msk [vmem:[%s3423_s3 + $0x300] sm:$0xff] %vm1375_vm2, %v2108_v42  ;;  %v1134_v47 = vadd.f32 %v1931_v44, %v2773_v3  ;;  %v808_v48 = vpop.f32.mrb[41].mxu0  ;;  %2131 = vtanh.f32 %v1119_v40 }
 0x132   :  { %v1128_v49 = vpop.f32.mrb[41].mxu1  ;;  %v2112_v50 = vpop.eup %2111  ;;  %1411 = vst.msk [vmem:[%s3423_s3 + $0x118] sm:$0xff] %vm1375_vm2, %v2110_v45  ;;  %v809_v51 = vadd.f32 %v2773_v3, %v808_v48  ;;  %2133 = vtanh.f32 %v814_v46 }
 0x133   :  { %v1129_v52 = vadd.f32 %v2773_v3, %v1128_v49  ;;  %v2114_v53 = vpop.eup %2113  ;;  %1475 = vst.msk [vmem:[%s3423_s3 + $0x318] sm:$0xff] %vm1375_vm2, %v2112_v50  ;;  %2135 = vtanh.f32 %v1134_v47  ;;  %v1838_v55 = vpop.f32.mrb[42].mxu0 }
 0x134   :  { %v2116_v54 = vpop.eup %2115  ;;  %1410 = vst.msk [vmem:[%s3423_s3 + $0x110] sm:$0xff] %vm1375_vm2, %v2114_v53  ;;  %v1934_v56 = vpop.f32.mrb[42].mxu1  ;;  %2137 = vtanh.f32 %v809_v51  ;;  %v824_v58 = vadd.f32 %v1838_v55, %v2773_v3 }
 0x135   :  { %v2118_v57 = vpop.eup %2117  ;;  %1474 = vst.msk [vmem:[%s3423_s3 + $0x310] sm:$0xff] %vm1375_vm2, %v2116_v54  ;;  %v1144_v59 = vadd.f32 %v1934_v56, %v2773_v3  ;;  %v818_v60 = vpop.f32.mrb[43].mxu0  ;;  %2139 = vtanh.f32 %v1129_v52 }
 0x136   :  { %v1138_v61 = vpop.f32.mrb[43].mxu1  ;;  %v2120_v62 = vpop.eup %2119  ;;  %1413 = vst.msk [vmem:[%s3423_s3 + $0x128] sm:$0xff] %vm1375_vm2, %v2118_v57  ;;  %v819_v63 = vadd.f32 %v2773_v3, %v818_v60  ;;  %2141 = vtanh.f32 %v824_v58 }
 0x137   :  { %v1139_v0 = vadd.f32 %v2773_v3, %v1138_v61  ;;  %v2122_v1 = vpop.eup %2121  ;;  %1477 = vst.msk [vmem:[%s3423_s3 + $0x328] sm:$0xff] %vm1375_vm2, %v2120_v62  ;;  %2143 = vtanh.f32 %v1144_v59  ;;  %v1841_v4 = vpop.f32.mrb[44].mxu0 }
 0x138   :  { %v2124_v2 = vpop.eup %2123  ;;  %1412 = vst.msk [vmem:[%s3423_s3 + $0x120] sm:$0xff] %vm1375_vm2, %v2122_v1  ;;  %v1937_v5 = vpop.f32.mrb[44].mxu1  ;;  %2145 = vtanh.f32 %v819_v63  ;;  %v834_v7 = vadd.f32 %v1841_v4, %v2773_v3 }
 0x139   :  { %v2126_v6 = vpop.eup %2125  ;;  %1476 = vst.msk [vmem:[%s3423_s3 + $0x320] sm:$0xff] %vm1375_vm2, %v2124_v2  ;;  %v1154_v8 = vadd.f32 %v1937_v5, %v2773_v3  ;;  %v828_v9 = vpop.f32.mrb[45].mxu0  ;;  %2147 = vtanh.f32 %v1139_v0 }
 0x13a   :  { %v1148_v10 = vpop.f32.mrb[45].mxu1  ;;  %v2128_v11 = vpop.eup %2127  ;;  %1415 = vst.msk [vmem:[%s3423_s3 + $0x138] sm:$0xff] %vm1375_vm2, %v2126_v6  ;;  %v829_v12 = vadd.f32 %v2773_v3, %v828_v9  ;;  %2149 = vtanh.f32 %v834_v7 }
 0x13b   :  { %v1149_v13 = vadd.f32 %v2773_v3, %v1148_v10  ;;  %v2130_v14 = vpop.eup %2129  ;;  %1479 = vst.msk [vmem:[%s3423_s3 + $0x338] sm:$0xff] %vm1375_vm2, %v2128_v11  ;;  %2151 = vtanh.f32 %v1154_v8  ;;  %v1844_v16 = vpop.f32.mrb[46].mxu0 }
 0x13c   :  { %v2132_v15 = vpop.eup %2131  ;;  %1414 = vst.msk [vmem:[%s3423_s3 + $0x130] sm:$0xff] %vm1375_vm2, %v2130_v14  ;;  %v1940_v17 = vpop.f32.mrb[46].mxu1  ;;  %2153 = vtanh.f32 %v829_v12  ;;  %v844_v19 = vadd.f32 %v1844_v16, %v2773_v3 }
 0x13d   :  { %v2134_v18 = vpop.eup %2133  ;;  %1478 = vst.msk [vmem:[%s3423_s3 + $0x330] sm:$0xff] %vm1375_vm2, %v2132_v15  ;;  %v1164_v20 = vadd.f32 %v1940_v17, %v2773_v3  ;;  %v838_v21 = vpop.f32.mrb[47].mxu0  ;;  %2155 = vtanh.f32 %v1149_v13 }
 0x13e   :  { %v1158_v22 = vpop.f32.mrb[47].mxu1  ;;  %v2136_v23 = vpop.eup %2135  ;;  %1417 = vst.msk [vmem:[%s3423_s3 + $0x148] sm:$0xff] %vm1375_vm2, %v2134_v18  ;;  %v839_v24 = vadd.f32 %v2773_v3, %v838_v21  ;;  %2157 = vtanh.f32 %v844_v19 }
 0x13f   :  { %v1159_v25 = vadd.f32 %v2773_v3, %v1158_v22  ;;  %v2138_v26 = vpop.eup %2137  ;;  %1481 = vst.msk [vmem:[%s3423_s3 + $0x348] sm:$0xff] %vm1375_vm2, %v2136_v23  ;;  %2159 = vtanh.f32 %v1164_v20  ;;  %v1847_v28 = vpop.f32.mrb[48].mxu0 }
 0x140   :  { %v2140_v27 = vpop.eup %2139  ;;  %1416 = vst.msk [vmem:[%s3423_s3 + $0x140] sm:$0xff] %vm1375_vm2, %v2138_v26  ;;  %v1943_v29 = vpop.f32.mrb[48].mxu1  ;;  %2161 = vtanh.f32 %v839_v24  ;;  %v854_v31 = vadd.f32 %v1847_v28, %v2773_v3 }
 0x141   :  { %v2142_v30 = vpop.eup %2141  ;;  %1480 = vst.msk [vmem:[%s3423_s3 + $0x340] sm:$0xff] %vm1375_vm2, %v2140_v27  ;;  %v1174_v32 = vadd.f32 %v1943_v29, %v2773_v3  ;;  %v848_v33 = vpop.f32.mrb[49].mxu0  ;;  %2163 = vtanh.f32 %v1159_v25 }
 0x142   :  { %v1168_v34 = vpop.f32.mrb[49].mxu1  ;;  %v2144_v35 = vpop.eup %2143  ;;  %1419 = vst.msk [vmem:[%s3423_s3 + $0x158] sm:$0xff] %vm1375_vm2, %v2142_v30  ;;  %v849_v36 = vadd.f32 %v2773_v3, %v848_v33  ;;  %2165 = vtanh.f32 %v854_v31 }
 0x143   :  { %v1169_v37 = vadd.f32 %v2773_v3, %v1168_v34  ;;  %v2146_v38 = vpop.eup %2145  ;;  %1483 = vst.msk [vmem:[%s3423_s3 + $0x358] sm:$0xff] %vm1375_vm2, %v2144_v35  ;;  %2167 = vtanh.f32 %v1174_v32  ;;  %v1850_v40 = vpop.f32.mrb[50].mxu0 }
 0x144   :  { %v2148_v39 = vpop.eup %2147  ;;  %1418 = vst.msk [vmem:[%s3423_s3 + $0x150] sm:$0xff] %vm1375_vm2, %v2146_v38  ;;  %v1946_v41 = vpop.f32.mrb[50].mxu1  ;;  %2169 = vtanh.f32 %v849_v36  ;;  %v864_v43 = vadd.f32 %v1850_v40, %v2773_v3 }
 0x145   :  { %v2150_v42 = vpop.eup %2149  ;;  %1482 = vst.msk [vmem:[%s3423_s3 + $0x350] sm:$0xff] %vm1375_vm2, %v2148_v39  ;;  %v1184_v44 = vadd.f32 %v1946_v41, %v2773_v3  ;;  %v858_v45 = vpop.f32.mrb[51].mxu0  ;;  %2171 = vtanh.f32 %v1169_v37 }
 0x146   :  { %v1178_v46 = vpop.f32.mrb[51].mxu1  ;;  %v2152_v47 = vpop.eup %2151  ;;  %1421 = vst.msk [vmem:[%s3423_s3 + $0x168] sm:$0xff] %vm1375_vm2, %v2150_v42  ;;  %v859_v48 = vadd.f32 %v2773_v3, %v858_v45  ;;  %2173 = vtanh.f32 %v864_v43 }
 0x147   :  { %v1179_v49 = vadd.f32 %v2773_v3, %v1178_v46  ;;  %v2154_v50 = vpop.eup %2153  ;;  %1485 = vst.msk [vmem:[%s3423_s3 + $0x368] sm:$0xff] %vm1375_vm2, %v2152_v47  ;;  %2175 = vtanh.f32 %v1184_v44  ;;  %v1853_v52 = vpop.f32.mrb[52].mxu0 }
 0x148   :  { %v2156_v51 = vpop.eup %2155  ;;  %1420 = vst.msk [vmem:[%s3423_s3 + $0x160] sm:$0xff] %vm1375_vm2, %v2154_v50  ;;  %v1949_v53 = vpop.f32.mrb[52].mxu1  ;;  %2177 = vtanh.f32 %v859_v48  ;;  %v874_v55 = vadd.f32 %v1853_v52, %v2773_v3 }
 0x149   :  { %v2158_v54 = vpop.eup %2157  ;;  %1484 = vst.msk [vmem:[%s3423_s3 + $0x360] sm:$0xff] %vm1375_vm2, %v2156_v51  ;;  %v1194_v56 = vadd.f32 %v1949_v53, %v2773_v3  ;;  %v868_v57 = vpop.f32.mrb[53].mxu0  ;;  %2179 = vtanh.f32 %v1179_v49 }
 0x14a   :  { %v1188_v58 = vpop.f32.mrb[53].mxu1  ;;  %v2160_v59 = vpop.eup %2159  ;;  %1423 = vst.msk [vmem:[%s3423_s3 + $0x178] sm:$0xff] %vm1375_vm2, %v2158_v54  ;;  %v869_v60 = vadd.f32 %v2773_v3, %v868_v57  ;;  %2181 = vtanh.f32 %v874_v55 }
 0x14b   :  { %v1189_v61 = vadd.f32 %v2773_v3, %v1188_v58  ;;  %v2162_v62 = vpop.eup %2161  ;;  %1487 = vst.msk [vmem:[%s3423_s3 + $0x378] sm:$0xff] %vm1375_vm2, %v2160_v59  ;;  %2183 = vtanh.f32 %v1194_v56  ;;  %v1856_v0 = vpop.f32.mrb[54].mxu0  ;;  %v3270_v3 = vld [vmem:[%s3422_s1] ss:$0 sm:$0xff] }
 0x14c   :  { %v2164_v63 = vpop.eup %2163  ;;  %1422 = vst.msk [vmem:[%s3423_s3 + $0x170] sm:$0xff] %vm1375_vm2, %v2162_v62  ;;  %v1952_v1 = vpop.f32.mrb[54].mxu1  ;;  %2185 = vtanh.f32 %v869_v60  ;;  %v884_v4 = vadd.f32 %v3270_v3, %v1856_v0 }
 0x14d   :  { %v2166_v2 = vpop.eup %2165  ;;  %1486 = vst.msk [vmem:[%s3423_s3 + $0x370] sm:$0xff] %vm1375_vm2, %v2164_v63  ;;  %v1204_v5 = vadd.f32 %v3270_v3, %v1952_v1  ;;  %v878_v6 = vpop.f32.mrb[55].mxu0  ;;  %2187 = vtanh.f32 %v1189_v61 }
 0x14e   :  { %v1198_v7 = vpop.f32.mrb[55].mxu1  ;;  %v2168_v8 = vpop.eup %2167  ;;  %1425 = vst.msk [vmem:[%s3423_s3 + $0x188] sm:$0xff] %vm1375_vm2, %v2166_v2  ;;  %v879_v9 = vadd.f32 %v3270_v3, %v878_v6  ;;  %2189 = vtanh.f32 %v884_v4 }
 0x14f   :  { %v1199_v10 = vadd.f32 %v3270_v3, %v1198_v7  ;;  %v2170_v11 = vpop.eup %2169  ;;  %1489 = vst.msk [vmem:[%s3423_s3 + $0x388] sm:$0xff] %vm1375_vm2, %v2168_v8  ;;  %2191 = vtanh.f32 %v1204_v5  ;;  %v1859_v13 = vpop.f32.mrb[56].mxu0 }
 0x150   :  { %v2172_v12 = vpop.eup %2171  ;;  %1424 = vst.msk [vmem:[%s3423_s3 + $0x180] sm:$0xff] %vm1375_vm2, %v2170_v11  ;;  %v1955_v14 = vpop.f32.mrb[56].mxu1  ;;  %2193 = vtanh.f32 %v879_v9  ;;  %v894_v16 = vadd.f32 %v3270_v3, %v1859_v13 }
 0x151   :  { %v2174_v15 = vpop.eup %2173  ;;  %1488 = vst.msk [vmem:[%s3423_s3 + $0x380] sm:$0xff] %vm1375_vm2, %v2172_v12  ;;  %v1214_v17 = vadd.f32 %v3270_v3, %v1955_v14  ;;  %v888_v18 = vpop.f32.mrb[57].mxu0  ;;  %2195 = vtanh.f32 %v1199_v10 }
 0x152   :  { %v1208_v19 = vpop.f32.mrb[57].mxu1  ;;  %v2176_v20 = vpop.eup %2175  ;;  %1427 = vst.msk [vmem:[%s3423_s3 + $0x198] sm:$0xff] %vm1375_vm2, %v2174_v15  ;;  %v889_v21 = vadd.f32 %v3270_v3, %v888_v18  ;;  %2197 = vtanh.f32 %v894_v16 }
 0x153   :  { %v1209_v22 = vadd.f32 %v3270_v3, %v1208_v19  ;;  %v2178_v23 = vpop.eup %2177  ;;  %1491 = vst.msk [vmem:[%s3423_s3 + $0x398] sm:$0xff] %vm1375_vm2, %v2176_v20  ;;  %2199 = vtanh.f32 %v1214_v17  ;;  %v1862_v25 = vpop.f32.mrb[58].mxu0 }
 0x154   :  { %v2180_v24 = vpop.eup %2179  ;;  %1426 = vst.msk [vmem:[%s3423_s3 + $0x190] sm:$0xff] %vm1375_vm2, %v2178_v23  ;;  %v1958_v26 = vpop.f32.mrb[58].mxu1  ;;  %2201 = vtanh.f32 %v889_v21  ;;  %v904_v28 = vadd.f32 %v3270_v3, %v1862_v25 }
 0x155   :  { %v2182_v27 = vpop.eup %2181  ;;  %1490 = vst.msk [vmem:[%s3423_s3 + $0x390] sm:$0xff] %vm1375_vm2, %v2180_v24  ;;  %v1224_v29 = vadd.f32 %v3270_v3, %v1958_v26  ;;  %v898_v30 = vpop.f32.mrb[59].mxu0  ;;  %2203 = vtanh.f32 %v1209_v22 }
 0x156   :  { %v1218_v31 = vpop.f32.mrb[59].mxu1  ;;  %v2184_v32 = vpop.eup %2183  ;;  %1429 = vst.msk [vmem:[%s3423_s3 + $0x1a8] sm:$0xff] %vm1375_vm2, %v2182_v27  ;;  %v899_v33 = vadd.f32 %v3270_v3, %v898_v30  ;;  %2205 = vtanh.f32 %v904_v28 }
 0x157   :  { %v1219_v34 = vadd.f32 %v3270_v3, %v1218_v31  ;;  %v2186_v35 = vpop.eup %2185  ;;  %1493 = vst.msk [vmem:[%s3423_s3 + $0x3a8] sm:$0xff] %vm1375_vm2, %v2184_v32  ;;  %2207 = vtanh.f32 %v1224_v29  ;;  %v1865_v37 = vpop.f32.mrb[60].mxu0 }
 0x158   :  { %v2188_v36 = vpop.eup %2187  ;;  %1428 = vst.msk [vmem:[%s3423_s3 + $0x1a0] sm:$0xff] %vm1375_vm2, %v2186_v35  ;;  %v1961_v38 = vpop.f32.mrb[60].mxu1  ;;  %2209 = vtanh.f32 %v899_v33  ;;  %v914_v40 = vadd.f32 %v3270_v3, %v1865_v37 }
 0x159   :  { %v2190_v39 = vpop.eup %2189  ;;  %1492 = vst.msk [vmem:[%s3423_s3 + $0x3a0] sm:$0xff] %vm1375_vm2, %v2188_v36  ;;  %v1234_v41 = vadd.f32 %v3270_v3, %v1961_v38  ;;  %v908_v42 = vpop.f32.mrb[61].mxu0  ;;  %2211 = vtanh.f32 %v1219_v34 }
 0x15a   :  { %v1228_v43 = vpop.f32.mrb[61].mxu1  ;;  %v2192_v44 = vpop.eup %2191  ;;  %1431 = vst.msk [vmem:[%s3423_s3 + $0x1b8] sm:$0xff] %vm1375_vm2, %v2190_v39  ;;  %v909_v45 = vadd.f32 %v3270_v3, %v908_v42  ;;  %2213 = vtanh.f32 %v914_v40 }
 0x15b   :  { %v1229_v46 = vadd.f32 %v3270_v3, %v1228_v43  ;;  %v2194_v47 = vpop.eup %2193  ;;  %1495 = vst.msk [vmem:[%s3423_s3 + $0x3b8] sm:$0xff] %vm1375_vm2, %v2192_v44  ;;  %2215 = vtanh.f32 %v1234_v41  ;;  %v1868_v49 = vpop.f32.mrb[62].mxu0 }
 0x15c   :  { %v2196_v48 = vpop.eup %2195  ;;  %1430 = vst.msk [vmem:[%s3423_s3 + $0x1b0] sm:$0xff] %vm1375_vm2, %v2194_v47  ;;  %v1964_v50 = vpop.f32.mrb[62].mxu1  ;;  %2217 = vtanh.f32 %v909_v45  ;;  %v924_v52 = vadd.f32 %v3270_v3, %v1868_v49 }
 0x15d   :  { %v2198_v51 = vpop.eup %2197  ;;  %1494 = vst.msk [vmem:[%s3423_s3 + $0x3b0] sm:$0xff] %vm1375_vm2, %v2196_v48  ;;  %v1244_v53 = vadd.f32 %v3270_v3, %v1964_v50  ;;  %v918_v54 = vpop.f32.mrb[63].mxu0  ;;  %2219 = vtanh.f32 %v1229_v46 }
 0x15e   :  { %v1238_v55 = vpop.f32.mrb[63].mxu1  ;;  %v2200_v56 = vpop.eup %2199  ;;  %1433 = vst.msk [vmem:[%s3423_s3 + $0x1c8] sm:$0xff] %vm1375_vm2, %v2198_v51  ;;  %v919_v57 = vadd.f32 %v3270_v3, %v918_v54  ;;  %2221 = vtanh.f32 %v924_v52 }
 0x15f   :  { %v1239_v58 = vadd.f32 %v3270_v3, %v1238_v55  ;;  %v2202_v59 = vpop.eup %2201  ;;  %1497 = vst.msk [vmem:[%s3423_s3 + $0x3c8] sm:$0xff] %vm1375_vm2, %v2200_v56  ;;  %2223 = vtanh.f32 %v1244_v53 }
 0x160   :  { %v2204_v60 = vpop.eup %2203  ;;  %1432 = vst.msk [vmem:[%s3423_s3 + $0x1c0] sm:$0xff] %vm1375_vm2, %v2202_v59  ;;  %2225 = vtanh.f32 %v919_v57 }
 0x161   :  { %v2206_v61 = vpop.eup %2205  ;;  %1496 = vst.msk [vmem:[%s3423_s3 + $0x3c0] sm:$0xff] %vm1375_vm2, %v2204_v60  ;;  %2227 = vtanh.f32 %v1239_v58 }
 0x162   :  { %v2208_v62 = vpop.eup %2207  ;;  %1435 = vst.msk [vmem:[%s3423_s3 + $0x1d8] sm:$0xff] %vm1375_vm2, %v2206_v61 }
 0x163   :  { %v2210_v63 = vpop.eup %2209  ;;  %1499 = vst.msk [vmem:[%s3423_s3 + $0x3d8] sm:$0xff] %vm1375_vm2, %v2208_v62 }
 0x164   :  { %v2212_v0 = vpop.eup %2211  ;;  %1434 = vst.msk [vmem:[%s3423_s3 + $0x1d0] sm:$0xff] %vm1375_vm2, %v2210_v63 }
 0x165   :  { %v2214_v1 = vpop.eup %2213  ;;  %1498 = vst.msk [vmem:[%s3423_s3 + $0x3d0] sm:$0xff] %vm1375_vm2, %v2212_v0 }
 0x166   :  { %v2216_v2 = vpop.eup %2215  ;;  %1437 = vst.msk [vmem:[%s3423_s3 + $0x1e8] sm:$0xff] %vm1375_vm2, %v2214_v1 }
 0x167   :  { %v2218_v3 = vpop.eup %2217  ;;  %1501 = vst.msk [vmem:[%s3423_s3 + $0x3e8] sm:$0xff] %vm1375_vm2, %v2216_v2 }
 0x168   :  { %v2220_v4 = vpop.eup %2219  ;;  %1436 = vst.msk [vmem:[%s3423_s3 + $0x1e0] sm:$0xff] %vm1375_vm2, %v2218_v3 }
 0x169   :  { %v2222_v5 = vpop.eup %2221  ;;  %1500 = vst.msk [vmem:[%s3423_s3 + $0x3e0] sm:$0xff] %vm1375_vm2, %v2220_v4 }
 0x16a   :  { %v2224_v6 = vpop.eup %2223  ;;  %1439 = vst.msk [vmem:[%s3423_s3 + $0x1f8] sm:$0xff] %vm1375_vm2, %v2222_v5 }
 0x16b   :  { %v2226_v7 = vpop.eup %2225  ;;  %1503 = vst.msk [vmem:[%s3423_s3 + $0x3f8] sm:$0xff] %vm1375_vm2, %v2224_v6 }
 0x16c   :  { %v2228_v8 = vpop.eup %2227  ;;  %1438 = vst.msk [vmem:[%s3423_s3 + $0x1f0] sm:$0xff] %vm1375_vm2, %v2226_v7 }
 0x16d   :  { %1502 = vst.msk [vmem:[%s3423_s3 + $0x3f0] sm:$0xff] %vm1375_vm2, %v2228_v8 }

</bundles_post_ra>
